<compile_context>
chip_gen: v7x
topology: tpu7x:2x2x1
jax: 0.10.0
libtpu: 0.0.40
codegen_flags: <defaults>
</compile_context>

<pallas_src>
import functools

import jax
import jax.numpy as jnp
from jax import lax
from jax.experimental import pallas as pl
from jax.experimental.pallas import tpu as pltpu

BN_EPS = 1e-5
IN_F = 10            # fc1 in/out features, bn features, fc2 in features
K_PAD = 16           # MXU contraction width (multiple of 8 sublanes)
D_PAD = 128          # lane width for hidden activations / parameter slab

# Parameter-slab row layout ((16, 128) f32, ~8 KiB).
ROW_W1 = 0           # rows 0..9 : fc1 weight stored (in, out)
ROW_B1 = 10          # fc1 bias
ROW_GAMMA = 11       # bn1 weight
ROW_BETA = 12        # bn1 bias
ROW_W2 = 13          # fc2 weight as a row over in-features
ROW_B2 = 14          # fc2 bias at lane 0
SLAB_ROWS = K_PAD    # 16 (row 15 unused)


def _round_up(n, m):
    return ((n + m - 1) // m) * m


def _make_kernel(batch, tile_b, needs_mask):
    inv_b = 1.0 / float(batch)

    def kernel(x_ref, p_ref, o_ref, xb_ref, stats_ref, coef_ref):
        phase = pl.program_id(0)   # 0 = batch-stats sweep, 1 = apply sweep
        i = pl.program_id(1)       # batch tile index

        @pl.when((phase == 0) & (i == 0))
        def _init():
            xb_ref[...] = jnp.zeros_like(xb_ref)       # pad lanes zeroed once
            stats_ref[...] = jnp.zeros_like(stats_ref)

        # ---- fc1 + ReLU for this batch tile (needed by both phases) --------
        # Lane-pad x inside the kernel: lanes 10..15 of xb stay zero, so the
        # non-weight rows of the slab contribute nothing to the dot.
        xb_ref[:, 0:IN_F] = x_ref[...]
        b1 = p_ref[ROW_B1:ROW_B1 + 1, :]
        h = jnp.dot(xb_ref[...], p_ref[...],            # (TB,16)@(16,128) MXU
                    preferred_element_type=jnp.float32) + b1
        h = jnp.maximum(h, 0.0)                         # lanes >= IN_F are 0

        # ---- phase 0: single-sweep batch statistics -------------------------
        @pl.when(phase == 0)
        def _stats():
            if needs_mask:
                rows = lax.broadcasted_iota(jnp.int32, (tile_b, D_PAD), 0) + i * tile_b
                hm = jnp.where(rows < batch, h, 0.0)    # drop padded batch rows
            else:
                hm = h
            stats_ref[0:1, :] += jnp.sum(hm, axis=0, keepdims=True)
            stats_ref[1:2, :] += jnp.sum(hm * hm, axis=0, keepdims=True)
            o_ref[...] = jnp.zeros_like(o_ref)          # deterministic placeholder

        # ---- phase 1: fold BN into fc2 once, then apply per tile ------------
        @pl.when(phase == 1)
        def _apply():
            @pl.when(i == 0)
            def _fold():
                gamma = p_ref[ROW_GAMMA:ROW_GAMMA + 1, :]
                beta = p_ref[ROW_BETA:ROW_BETA + 1, :]
                w2 = p_ref[ROW_W2:ROW_W2 + 1, :]
                b2 = p_ref[ROW_B2:ROW_B2 + 1, 0:1]
                mean = stats_ref[0:1, :] * inv_b
                ex2 = stats_ref[1:2, :] * inv_b
                var = jnp.maximum(ex2 - mean * mean, 0.0)   # guard f32 cancellation
                scale = gamma * lax.rsqrt(var + BN_EPS)     # rsqrt -> EUP slot
                shift = beta - mean * scale
                coef_ref[0:1, :] = w2 * scale               # BN scale folded into fc2
                bias = jnp.sum(shift * w2, axis=-1, keepdims=True) + b2
                coef_ref[1:2, :] = jnp.broadcast_to(bias, (1, D_PAD))

            w2s = coef_ref[0:1, :]
            bias = coef_ref[1:2, 0:1]
            out = jnp.sum(h * w2s, axis=-1, keepdims=True) + bias   # (TB, 1)
            o_ref[...] = out.astype(o_ref.dtype)

    return kernel


@functools.partial(jax.jit, static_argnames=("tile_batch",))
def simple_model_forward(x, param_slab, tile_batch=None):
    """x: (B, 10) float -> (B, 1) f32. Fused fc1 -> relu -> bn1(train) -> fc2."""
    batch = x.shape[0]
    assert x.shape[1] == IN_F and param_slab.shape == (SLAB_ROWS, D_PAD)

    tb = 1024 if tile_batch is None else int(tile_batch)
    tb = _round_up(min(tb, _round_up(batch, 8)), 8)
    b_pad = _round_up(batch, tb)
    num_tiles = b_pad // tb
    needs_mask = b_pad != batch

    x32 = x.astype(jnp.float32)
    if b_pad != batch:
        x32 = jnp.pad(x32, ((0, b_pad - batch), (0, 0)))   # rows only; tiny

    kernel = _make_kernel(batch, tb, needs_mask)

    flops = 2 * (2 * b_pad * K_PAD * D_PAD + 8 * b_pad * D_PAD)
    bytes_accessed = 2 * b_pad * IN_F * 4 + SLAB_ROWS * D_PAD * 4 + 2 * b_pad * 4
    vmem_limit = int(min(64 << 20, max(16 << 20, 20 * tb * D_PAD * 4)))

    out = pl.pallas_call(
        kernel,
        out_shape=jax.ShapeDtypeStruct((b_pad, 1), jnp.float32),
        grid_spec=pltpu.PrefetchScalarGridSpec(
            num_scalar_prefetch=0,
            grid=(2, num_tiles),
            in_specs=[
                pl.BlockSpec((tb, IN_F), lambda p, i: (i, 0)),          # x tiles
                pl.BlockSpec((SLAB_ROWS, D_PAD), lambda p, i: (0, 0)),  # resident slab
            ],
            out_specs=pl.BlockSpec((tb, 1), lambda p, i: (i, 0)),
            scratch_shapes=[
                pltpu.VMEM((tb, K_PAD), jnp.float32),   # lane-padded x tile
                pltpu.VMEM((2, D_PAD), jnp.float32),    # sum / sum-of-squares
                pltpu.VMEM((2, D_PAD), jnp.float32),    # folded fc2 weight / bias
            ],
        ),
        compiler_params=pltpu.CompilerParams(
            dimension_semantics=("arbitrary", "arbitrary"),
            vmem_limit_bytes=vmem_limit,
        ),
        cost_estimate=pl.CostEstimate(
            flops=flops, transcendentals=D_PAD, bytes_accessed=bytes_accessed),
    )(x32, param_slab)
    return out[:batch]


def pack_params(fc1_w, fc1_b, bn_w, bn_b, fc2_w, fc2_b):
    """Pack PyTorch-layout parameters into one (16, 128) f32 slab.

    fc1_w: (10, 10) as nn.Linear stores it, i.e. (out_features, in_features).
    fc2_w: (1, 10)  (out_features, in_features).
    The kernel computes x @ W.T, so weights are transposed here, explicitly.
    """
    slab = jnp.zeros((SLAB_ROWS, D_PAD), jnp.float32)
    w1 = jnp.asarray(fc1_w, jnp.float32).reshape(IN_F, IN_F).T       # -> (in, out)
    w2 = jnp.asarray(fc2_w, jnp.float32).reshape(1, IN_F)            # row over in
    slab = slab.at[ROW_W1:ROW_W1 + IN_F, 0:IN_F].set(w1)
    slab = slab.at[ROW_B1, 0:IN_F].set(jnp.asarray(fc1_b, jnp.float32).reshape(IN_F))
    slab = slab.at[ROW_GAMMA, 0:IN_F].set(jnp.asarray(bn_w, jnp.float32).reshape(IN_F))
    slab = slab.at[ROW_BETA, 0:IN_F].set(jnp.asarray(bn_b, jnp.float32).reshape(IN_F))
    slab = slab.at[ROW_W2, 0:IN_F].set(w2.reshape(IN_F))
    slab = slab.at[ROW_B2, 0].set(jnp.asarray(fc2_b, jnp.float32).reshape(()))
    return slab


def init_params(key):
    """Deterministic PyTorch-Linear-like init, in PyTorch (out, in) layout."""
    k1, k2, k3, k4, k5, k6 = jax.random.split(key, 6)
    bound = 1.0 / jnp.sqrt(jnp.float32(IN_F))
    fc1_w = jax.random.uniform(k1, (IN_F, IN_F), jnp.float32, -bound, bound)
    fc1_b = jax.random.uniform(k2, (IN_F,), jnp.float32, -bound, bound)
    bn_w = jax.random.uniform(k3, (IN_F,), jnp.float32, 0.5, 1.5)
    bn_b = jax.random.uniform(k4, (IN_F,), jnp.float32, -0.5, 0.5)
    fc2_w = jax.random.uniform(k5, (1, IN_F), jnp.float32, -bound, bound)
    fc2_b = jax.random.uniform(k6, (1,), jnp.float32, -bound, bound)
    return fc1_w, fc1_b, bn_w, bn_b, fc2_w, fc2_b


def reference_forward(x, fc1_w, fc1_b, bn_w, bn_b, fc2_w, fc2_b):
    """Pure-JAX reference matching PyTorch train()-mode forward."""
    h = jnp.maximum(x @ fc1_w.T + fc1_b, 0.0)
    m = jnp.mean(h, axis=0, keepdims=True)
    v = jnp.mean((h - m) ** 2, axis=0, keepdims=True)
    hn = (h - m) * lax.rsqrt(v + BN_EPS) * bn_w + bn_b
    return hn @ fc2_w.T + fc2_b


if __name__ == "__main__":
    key = jax.random.PRNGKey(0)
    kx, kp = jax.random.split(key)
    params = init_params(kp)
    slab = pack_params(*params)

    # Primary small test (module implies features = 10).
    x = jax.random.normal(kx, (8, IN_F), jnp.float32)
    out = jax.block_until_ready(simple_model_forward(x, slab))
    ref = reference_forward(x, *params)
    assert out.shape == (8, 1)
    assert jnp.allclose(out, ref, atol=1e-4, rtol=1e-3)

    # Ragged batch (exercises the in-kernel row mask for batch statistics).
    x2 = jax.random.normal(jax.random.PRNGKey(1), (13, IN_F), jnp.float32)
    out2 = jax.block_until_ready(simple_model_forward(x2, slab))
    assert jnp.allclose(out2, reference_forward(x2, *params), atol=1e-4, rtol=1e-3)

    # Multi-tile batch grid (two-phase BN across 3 tiles of 16 rows).
    x3 = jax.random.normal(jax.random.PRNGKey(2), (40, IN_F), jnp.float32)
    out3 = jax.block_until_ready(simple_model_forward(x3, slab, tile_batch=16))
    assert jnp.allclose(out3, reference_forward(x3, *params), atol=1e-4, rtol=1e-3)

    print("KERNEL_OK")
</pallas_src>

<mosaic_0001>
module attributes {stable_mosaic.version = 11 : i64} {
  func.func @kernel(%arg0: i32, %arg1: i32, %arg2: memref<8x10xf32, #tpu.memory_space<vmem>>, %arg3: memref<16x128xf32, #tpu.memory_space<vmem>>, %arg4: memref<8x1xf32, #tpu.memory_space<vmem>>, %arg5: memref<8x16xf32, #tpu.memory_space<vmem>>, %arg6: memref<2x128xf32, #tpu.memory_space<vmem>>, %arg7: memref<2x128xf32, #tpu.memory_space<vmem>>) attributes {dimension_semantics = [#tpu.dimension_semantics<arbitrary>, #tpu.dimension_semantics<arbitrary>], iteration_bounds = array<i64: 2, 1>, scalar_prefetch = 0 : i64, scratch_operands = 3 : i64, tpu.core_type = #tpu.core_type<tc>, window_params = [{transform_indices = @transform_0, window_bounds = array<i64: 8, 10>}, {pipeline_mode = #tpu.pipeline_mode<synchronous>, transform_indices = @transform_1, window_bounds = array<i64: 16, 128>}, {transform_indices = @transform_2, window_bounds = array<i64: 8, 1>}]} {
    %c0_i32 = arith.constant 0 : i32
    %0 = arith.cmpi eq, %arg0, %c0_i32 : i32
    %c0_i32_0 = arith.constant 0 : i32
    %1 = arith.cmpi eq, %arg1, %c0_i32_0 : i32
    %2 = arith.andi %0, %1 : i1
    %3 = arith.extui %2 : i1 to i32
    %c0_i32_1 = arith.constant 0 : i32
    %4 = arith.cmpi ne, %3, %c0_i32_1 : i32
    scf.if %4 {
      %cst_14 = arith.constant 0.000000e+00 : f32
      %21 = vector.broadcast %cst_14 : f32 to vector<8x16xf32>
      %c0_15 = arith.constant 0 : index
      %c0_16 = arith.constant 0 : index
      %22 = vector.load %arg5[%c0_15, %c0_16] : memref<8x16xf32, #tpu.memory_space<vmem>>, vector<8x16xf32>
      tpu.vector_store %arg5[%c0_15, %c0_16], %21 {strides = array<i32>} : memref<8x16xf32, #tpu.memory_space<vmem>>, vector<8x16xf32>,
      %cst_17 = arith.constant 0.000000e+00 : f32
      %23 = vector.broadcast %cst_17 : f32 to vector<2x128xf32>
      %c0_18 = arith.constant 0 : index
      %c0_19 = arith.constant 0 : index
      %24 = vector.load %arg6[%c0_18, %c0_19] : memref<2x128xf32, #tpu.memory_space<vmem>>, vector<2x128xf32>
      tpu.vector_store %arg6[%c0_18, %c0_19], %23 {strides = array<i32>} : memref<2x128xf32, #tpu.memory_space<vmem>>, vector<2x128xf32>,
    } else {
    }
    %c0 = arith.constant 0 : index
    %c0_2 = arith.constant 0 : index
    %5 = vector.load %arg2[%c0, %c0_2] : memref<8x10xf32, #tpu.memory_space<vmem>>, vector<8x10xf32>
    %c0_3 = arith.constant 0 : index
    %c0_4 = arith.constant 0 : index
    %6 = vector.load %arg5[%c0_3, %c0_4] : memref<8x16xf32, #tpu.memory_space<vmem>>, vector<8x10xf32>
    tpu.vector_store %arg5[%c0_3, %c0_4], %5 {strides = array<i32>} : memref<8x16xf32, #tpu.memory_space<vmem>>, vector<8x10xf32>,
    %c10 = arith.constant 10 : index
    %c0_5 = arith.constant 0 : index
    %7 = vector.load %arg3[%c10, %c0_5] : memref<16x128xf32, #tpu.memory_space<vmem>>, vector<1x128xf32>
    %c0_6 = arith.constant 0 : index
    %c0_7 = arith.constant 0 : index
    %8 = vector.load %arg5[%c0_6, %c0_7] : memref<8x16xf32, #tpu.memory_space<vmem>>, vector<8x16xf32>
    %c0_8 = arith.constant 0 : index
    %c0_9 = arith.constant 0 : index
    %9 = vector.load %arg3[%c0_8, %c0_9] : memref<16x128xf32, #tpu.memory_space<vmem>>, vector<16x128xf32>
    %cst = arith.constant dense<0.000000e+00> : vector<8x128xf32>
    %10 = tpu.matmul %8, %9, %cst {dimension_numbers = #tpu.dot_dimension_numbers<[1], [0], [0], [1], [0, 0, 1, 1], [], []>} : vector<8x16xf32>, vector<16x128xf32>, vector<8x128xf32> -> vector<8x128xf32>
    %11 = vector.broadcast %7 : vector<1x128xf32> to vector<8x128xf32>
    %12 = arith.addf %10, %11 : vector<8x128xf32>
    %cst_10 = arith.constant 0.000000e+00 : f32
    %13 = vector.broadcast %cst_10 : f32 to vector<8x128xf32>
    %14 = arith.maximumf %12, %13 : vector<8x128xf32>
    %c0_i32_11 = arith.constant 0 : i32
    %15 = arith.cmpi eq, %arg0, %c0_i32_11 : i32
    %16 = arith.extui %15 : i1 to i32
    %c0_i32_12 = arith.constant 0 : i32
    %17 = arith.cmpi ne, %16, %c0_i32_12 : i32
    scf.if %17 {
      %c0_14 = arith.constant 0 : index
      %c0_15 = arith.constant 0 : index
      %21 = vector.load %arg6[%c0_14, %c0_15] : memref<2x128xf32, #tpu.memory_space<vmem>>, vector<1x128xf32>
      %cst_16 = arith.constant dense<0.000000e+00> : vector<128xf32>
      %22 = vector.multi_reduction <add>, %14, %cst_16 [0] : vector<8x128xf32> to vector<128xf32>
      %23 = vector.shape_cast %22 : vector<128xf32> to vector<1x128xf32>
      %24 = arith.addf %21, %23 : vector<1x128xf32>
      %c0_17 = arith.constant 0 : index
      %c0_18 = arith.constant 0 : index
      %25 = vector.load %arg6[%c0_17, %c0_18] : memref<2x128xf32, #tpu.memory_space<vmem>>, vector<1x128xf32>
      tpu.vector_store %arg6[%c0_17, %c0_18], %24 {strides = array<i32>} : memref<2x128xf32, #tpu.memory_space<vmem>>, vector<1x128xf32>,
      %c1 = arith.constant 1 : index
      %c0_19 = arith.constant 0 : index
      %26 = vector.load %arg6[%c1, %c0_19] : memref<2x128xf32, #tpu.memory_space<vmem>>, vector<1x128xf32>
      %27 = arith.mulf %14, %14 : vector<8x128xf32>
      %cst_20 = arith.constant dense<0.000000e+00> : vector<128xf32>
      %28 = vector.multi_reduction <add>, %27, %cst_20 [0] : vector<8x128xf32> to vector<128xf32>
      %29 = vector.shape_cast %28 : vector<128xf32> to vector<1x128xf32>
      %30 = arith.addf %26, %29 : vector<1x128xf32>
      %c1_21 = arith.constant 1 : index
      %c0_22 = arith.constant 0 : index
      %31 = vector.load %arg6[%c1_21, %c0_22] : memref<2x128xf32, #tpu.memory_space<vmem>>, vector<1x128xf32>
      tpu.vector_store %arg6[%c1_21, %c0_22], %30 {strides = array<i32>} : memref<2x128xf32, #tpu.memory_space<vmem>>, vector<1x128xf32>,
      %cst_23 = arith.constant 0.000000e+00 : f32
      %32 = vector.broadcast %cst_23 : f32 to vector<8x1xf32>
      %c0_24 = arith.constant 0 : index
      %c0_25 = arith.constant 0 : index
      %33 = vector.load %arg4[%c0_24, %c0_25] : memref<8x1xf32, #tpu.memory_space<vmem>>, vector<8x1xf32>
      tpu.vector_store %arg4[%c0_24, %c0_25], %32 {strides = array<i32>} : memref<8x1xf32, #tpu.memory_space<vmem>>, vector<8x1xf32>,
    } else {
    }
    %c1_i32 = arith.constant 1 : i32
    %18 = arith.cmpi eq, %arg0, %c1_i32 : i32
    %19 = arith.extui %18 : i1 to i32
    %c0_i32_13 = arith.constant 0 : i32
    %20 = arith.cmpi ne, %19, %c0_i32_13 : i32
    scf.if %20 {
      %c0_i32_14 = arith.constant 0 : i32
      %21 = arith.cmpi eq, %arg1, %c0_i32_14 : i32
      %22 = arith.extui %21 : i1 to i32
      %c0_i32_15 = arith.constant 0 : i32
      %23 = arith.cmpi ne, %22, %c0_i32_15 : i32
      scf.if %23 {
        %c11 = arith.constant 11 : index
        %c0_22 = arith.constant 0 : index
        %33 = vector.load %arg3[%c11, %c0_22] : memref<16x128xf32, #tpu.memory_space<vmem>>, vector<1x128xf32>
        %c12 = arith.constant 12 : index
        %c0_23 = arith.constant 0 : index
        %34 = vector.load %arg3[%c12, %c0_23] : memref<16x128xf32, #tpu.memory_space<vmem>>, vector<1x128xf32>
        %c13 = arith.constant 13 : index
        %c0_24 = arith.constant 0 : index
        %35 = vector.load %arg3[%c13, %c0_24] : memref<16x128xf32, #tpu.memory_space<vmem>>, vector<1x128xf32>
        %c14 = arith.constant 14 : index
        %c0_25 = arith.constant 0 : index
        %36 = vector.load %arg3[%c14, %c0_25] : memref<16x128xf32, #tpu.memory_space<vmem>>, vector<1x1xf32>
        %c0_26 = arith.constant 0 : index
        %c0_27 = arith.constant 0 : index
        %37 = vector.load %arg6[%c0_26, %c0_27] : memref<2x128xf32, #tpu.memory_space<vmem>>, vector<1x128xf32>
        %cst_28 = arith.constant 1.250000e-01 : f32
        %38 = vector.broadcast %cst_28 : f32 to vector<1x128xf32>
        %39 = arith.mulf %37, %38 : vector<1x128xf32>
        %c1_29 = arith.constant 1 : index
        %c0_30 = arith.constant 0 : index
        %40 = vector.load %arg6[%c1_29, %c0_30] : memref<2x128xf32, #tpu.memory_space<vmem>>, vector<1x128xf32>
        %cst_31 = arith.constant 1.250000e-01 : f32
        %41 = vector.broadcast %cst_31 : f32 to vector<1x128xf32>
        %42 = arith.mulf %40, %41 : vector<1x128xf32>
        %43 = arith.mulf %39, %39 : vector<1x128xf32>
        %44 = arith.subf %42, %43 : vector<1x128xf32>
        %cst_32 = arith.constant 0.000000e+00 : f32
        %45 = vector.broadcast %cst_32 : f32 to vector<1x128xf32>
        %46 = arith.maximumf %44, %45 : vector<1x128xf32>
        %cst_33 = arith.constant 9.99999974E-6 : f32
        %47 = vector.broadcast %cst_33 : f32 to vector<1x128xf32>
        %48 = arith.addf %46, %47 : vector<1x128xf32>
        %49 = math.rsqrt %48 : vector<1x128xf32>
        %50 = arith.mulf %33, %49 : vector<1x128xf32>
        %51 = arith.mulf %39, %50 : vector<1x128xf32>
        %52 = arith.subf %34, %51 : vector<1x128xf32>
        %53 = arith.mulf %35, %50 : vector<1x128xf32>
        %c0_34 = arith.constant 0 : index
        %c0_35 = arith.constant 0 : index
        %54 = vector.load %arg7[%c0_34, %c0_35] : memref<2x128xf32, #tpu.memory_space<vmem>>, vector<1x128xf32>
        tpu.vector_store %arg7[%c0_34, %c0_35], %53 {strides = array<i32>} : memref<2x128xf32, #tpu.memory_space<vmem>>, vector<1x128xf32>,
        %55 = arith.mulf %52, %35 : vector<1x128xf32>
        %cst_36 = arith.constant dense<0.000000e+00> : vector<1xf32>
        %56 = vector.multi_reduction <add>, %55, %cst_36 [1] : vector<1x128xf32> to vector<1xf32>
        %57 = vector.shape_cast %56 : vector<1xf32> to vector<1x1xf32>
        %58 = arith.addf %57, %36 : vector<1x1xf32>
        %59 = vector.shape_cast %58 : vector<1x1xf32> to vector<1x1xf32>
        %60 = vector.broadcast %59 : vector<1x1xf32> to vector<1x128xf32>
        %c1_37 = arith.constant 1 : index
        %c0_38 = arith.constant 0 : index
        %61 = vector.load %arg7[%c1_37, %c0_38] : memref<2x128xf32, #tpu.memory_space<vmem>>, vector<1x128xf32>
        tpu.vector_store %arg7[%c1_37, %c0_38], %60 {strides = array<i32>} : memref<2x128xf32, #tpu.memory_space<vmem>>, vector<1x128xf32>,
      } else {
      }
      %c0_16 = arith.constant 0 : index
      %c0_17 = arith.constant 0 : index
      %24 = vector.load %arg7[%c0_16, %c0_17] : memref<2x128xf32, #tpu.memory_space<vmem>>, vector<1x128xf32>
      %c1 = arith.constant 1 : index
      %c0_18 = arith.constant 0 : index
      %25 = vector.load %arg7[%c1, %c0_18] : memref<2x128xf32, #tpu.memory_space<vmem>>, vector<1x1xf32>
      %26 = vector.broadcast %24 : vector<1x128xf32> to vector<8x128xf32>
      %27 = arith.mulf %14, %26 : vector<8x128xf32>
      %cst_19 = arith.constant dense<0.000000e+00> : vector<8xf32>
      %28 = vector.multi_reduction <add>, %27, %cst_19 [1] : vector<8x128xf32> to vector<8xf32>
      %29 = vector.shape_cast %28 : vector<8xf32> to vector<8x1xf32>
      %30 = vector.broadcast %25 : vector<1x1xf32> to vector<8x1xf32>
      %31 = arith.addf %29, %30 : vector<8x1xf32>
      %c0_20 = arith.constant 0 : index
      %c0_21 = arith.constant 0 : index
      %32 = vector.load %arg4[%c0_20, %c0_21] : memref<8x1xf32, #tpu.memory_space<vmem>>, vector<8x1xf32>
      tpu.vector_store %arg4[%c0_20, %c0_21], %31 {strides = array<i32>} : memref<8x1xf32, #tpu.memory_space<vmem>>, vector<8x1xf32>,
    } else {
    }
    return
  }
  func.func @transform_0(%arg0: i32, %arg1: i32) -> (i32, i32) {
    %c0_i32 = arith.constant 0 : i32
    %c0_i32_0 = arith.constant 0 : i32
    return %arg1, %c0_i32 : i32, i32
  }
  func.func @transform_1(%arg0: i32, %arg1: i32) -> (i32, i32) {
    %c0_i32 = arith.constant 0 : i32
    %c0_i32_0 = arith.constant 0 : i32
    %c0_i32_1 = arith.constant 0 : i32
    return %c0_i32, %c0_i32_0 : i32, i32
  }
  func.func @transform_2(%arg0: i32, %arg1: i32) -> (i32, i32) {
    %c0_i32 = arith.constant 0 : i32
    %c0_i32_0 = arith.constant 0 : i32
    return %arg1, %c0_i32 : i32, i32
  }
}

</mosaic_0001>

<bundles_post_ra>
// kernel: simple_model_forward.1
= control target key start
LH: loop header
LB: loop body
LE: loop exit
PB: predicated region body
PF: predicated region fallthrough
CT: control target
= control target key end

     0   :  { %7 = vsyncpa [#allocation6], 0  ;;  %s726_s0 = inlined_call_operand.hbm [shape: f32[8,10], index: 0, kind: input, shape index: {}]   ;;  %s727_s1 = inlined_call_operand.hbm [shape: f32[16,128], index: 1, kind: input, shape index: {}]   ;;  %s728_s2 = inlined_call_operand.vmem [shape: f32[8,1], index: 2, kind: output, shape index: {}]  }
   0x1   :  { %8 = vsyncpa [#allocation8], 0  ;;  %s612_s9 = smov 0   ;;  %s614_s10 = smov 0  }
   0x2   :  { %s616_s11 = smov 0  }
   0x3 LB: > { %s412_s12 = sadd.s32 4294967295, %s585_s11   ;;  %s26_s13 = sadd.s32 1, %s581_s10  ;;  %s585_s11 = sphi %s616_s11, %s14_s11   ;;  %s581_s10 = sphi %s614_s10, %s738_s10   ;;  %s577_s9 = sphi %s612_s9, %s737_s9  }
   0x4   : > { %p28_p0 = scmp.ge.s32.totalorder %s26_s13, 2  ;;  %p413_p1 = scmp.ge.s32.totalorder %s585_s11, 1 }
   0x5   : > { %p104_p2 = scmp.lt.s32.totalorder %s585_s11, 3  ;;  %p637_p4 = scmp.eq.s32.totalorder %s412_s12, 0 }
   0x6   : > { %s740_s13 = smov (%p28_p0, %s26_s13), 0  ;;  %s587_s16 = smov [#allocation5]  }
   0x7   : > { %p633_p3 = pnand %p413_p1, %p104_p2  ;;  %s119_s17 = sshll.u32 %s587_s16, 4  ;;  %s120_s17 = int_to_ptr.vmem [resolvable:$true] %s119_s17 }
   0x8   : > { %s733_s15 = scalar_select %p637_p4, 1, 0 }
   0x9   : > { %s732_s14 = scalar_select %p633_p3, 1, 0 }
   0xa   : > { %p451_p5 = pneg %p633_p3  ;;  %s588_s18 = smov [#allocation7]  }
   0xb   : > { %s129_s19 = sshll.u32 %s588_s18, 4  ;;  %s499_s23 = scalar_lea.hbm %s726_s0, 128  ;;  %s649_s19 = int_to_ptr.vmem [resolvable:$true] %s129_s19 }
   0xc   : > { %p645_p6 = pnand %p637_p4, %p451_p5  ;;  %p500_p7 = scmp.ne.s32.totalorder %s726_s0, %s499_s23 }
   0xd   : > { %p506_p11 = scmp.lt.u32.totalorder %s499_s23, %s726_s0 }
   0xe   : > { %p501_p8 = pneg %p645_p6 }
  0x10   : > { %p502_p9 = pnand %p501_p8, %p500_p7 }
  0x12   : > { %p503_p10 = pneg %p502_p9 }
  0x14   : > { %p508_p12 = pnand %p506_p11, %p503_p10 }
  0x16   : > { %511 = shalt.err (!%p508_p12)
}
  0x17   : > { %s512_s28 = scalar_lea.vmem %s120_s17, 128  ;;  %p520_p2 = scmp.lt.s32.totalorder %s120_s17, %s120_s17 }
  0x18   : > { %p513_p13 = scmp.ne.s32.totalorder %s120_s17, %s512_s28  ;;  %p521_p5 = scmp.lt.s32.totalorder %s512_s28, %s512_s28 }
  0x1a   : > { %p515_p0 = pnand %p513_p13, %p501_p8  ;;  %p522_p4 = por %p521_p5, %p520_p2 }
  0x1c   : > { %p516_p1 = pneg %p515_p0 }
  0x1e   : > { %p523_p3 = pnand %p522_p4, %p516_p1 }
  0x20   : > { %526 = shalt.err (!%p523_p3)
}
  0x21   : > { %454 = dma.hbm_to_vmem [thread:$0]  (!%p645_p6), %s726_s0, 128, %s120_s17, [#allocation6]  }
  0x22   : > { %s527_s5 = scalar_lea.hbm %s727_s1, 256 }
  0x23   : > { %p528_p7 = scmp.ne.s32.totalorder %s727_s1, %s527_s5  ;;  %p534_p3 = scmp.lt.u32.totalorder %s527_s5, %s727_s1 }
  0x25   : > { %p530_p9 = pnand %p528_p7, %p501_p8 }
  0x27   : > { %p531_p4 = pneg %p530_p9 }
  0x29   : > { %p536_p10 = pnand %p534_p3, %p531_p4 }
  0x2b   : > { %539 = shalt.err (!%p536_p10)
}
  0x2c   : > { %s540_s16 = scalar_lea.vmem %s649_s19, 256  ;;  %p548_p0 = scmp.lt.s32.totalorder %s649_s19, %s649_s19 }
  0x2d   : > { %p541_p11 = scmp.ne.s32.totalorder %s649_s19, %s540_s16  ;;  %p549_p1 = scmp.lt.s32.totalorder %s540_s16, %s540_s16 }
  0x2f   : > { %p543_p12 = pnand %p541_p11, %p501_p8  ;;  %p550_p2 = por %p549_p1, %p548_p0 }
  0x31   : > { %p544_p13 = pneg %p543_p12 }
  0x33   : > { %p551_p5 = pnand %p550_p2, %p544_p13 }
  0x35   : > { %554 = shalt.err (!%p551_p5)
}
  0x36   : > { %s589_s17 = smov 128   ;;  %s590_s18 = smov 8  }
  0x37   : > { %457 = dma.hbm_to_vmem [thread:$0]  (!%p645_p6), %s727_s1, 256, %s649_s19, [#allocation8], %s589_s17, %s589_s17, %s590_s18  }
  0x38   : > { %p735_p7 = scmp.ne.s32.totalorder %s732_s14, 0 }
  0x39   : > { %p736_p8 = scmp.ne.s32.totalorder (!%p735_p7), %s733_s15, 0 }
  0x3a   : > { %145 = sbr.rel (%p735_p7) target bundleno = 638 (0x27e), region = 28 }
  0x41   : > { %568 = dma.done.wait (%p736_p8), [#allocation6], 128  }
  0x42   : > { %570 = vsyncadd (%p736_p8), [#allocation6], 4294967168 }
  0x43   : > { %572 = dma.done.wait (%p736_p8), [#allocation8], 256  }
  0x44   : > { %574 = vsyncadd (%p736_p8), [#allocation8], 4294967040  ;;  %p169_p9 = scmp.eq.s32.totalorder %s577_s9, 0 }
  0x45   : > { %vm175_vm0 = vcmask (%p169_p9), 130048   ;;  %v591_v0 = vmov (%p169_p9), 0.0  }
  0x46   : > { %174 = sbr.rel (!%p169_p9) target bundleno = 77 (0x4d), region = 40  ;;  %176 = vst.msk [vmem:[#allocation2] sm:$0xff] (%p169_p9), %vm175_vm0, %v591_v0  ;;  %177 = vst [vmem:[#allocation3] sm:$0x3] (%p169_p9), %v591_v0 }
  0x4d PF: > { %v183_v1 = vld [vmem:[#allocation7] sm:$0xff]  ;;  %v184_v2 = vld [vmem:[#allocation7 + $0x8] sm:$0xff]  ;;  %v178_v3 = vld [vmem:[#allocation5] sm:$0xff]  ;;  %v592_v4 = vmov 0.0|0.0   ;;  %vm593_vm1 = vmmov 0   ;;  %v594_v6 = vmov 0.0  }
  0x4e   : > { %440 = vmatprep.subr.bf16.mxu0 %v592_v4  ;;  %v441_v5 = vpack.c.bf16 %v184_v2, %v183_v1  ;;  %437 = vmatprep.mubr.msk.f32.mxu0 %vm593_vm1, %v594_v6  ;;  %vm179_vm2 = vcmask 80896   ;;  %vm189_vm3 = vcmask 130048   ;;  %v420_v8 = vld [vmem:[#allocation7 + $0xa] ss:$0 sm:$0xff]  ;;  %p422_p6 = scmp.ne.s32.totalorder %s577_s9, 0 }
  0x4f   : > { %180 = vst.msk [vmem:[#allocation2] sm:$0xff] %vm179_vm2, %v178_v3  ;;  %vm286_vm4 = vcmask (!%p422_p6), 7168   ;;  %v595_v17 = vmov (!%p422_p6), 0.0   ;;  %v267_v24 = vld [vmem:[#allocation3] sm:$0x1] (!%p422_p6) }
  0x50   : > { %442 = vmatpush3.bf16.msra.mxu0 %v441_v5  ;;  %287 = vst.msk [vmem:[%s728_s2] sm:$0xff] (!%p422_p6), %vm286_vm4, %v595_v17  ;;  %v276_v27 = vld [vmem:[#allocation3 + $0x1] sm:$0x1] (!%p422_p6) }
  0x56   : > { %v182_v7 = vld [vmem:[#allocation2] sm:$0xff] }
  0x57   : > { %438 = vmatmul.mubr.msk.f32.vlgmr.msra.gmra.mrb[0].mxu0 %vm189_vm3, %v182_v7 }
 0x127   : > { %266 = sbr.rel (%p422_p6) target bundleno = 320 (0x140), region = 44 }
 0x12a   : > { %v259_v9 = vpop.f32.mrb[0].mxu0 }
 0x12b   : > { %v260_v10 = vadd.f32 %v420_v8, %v259_v9  ;;  %v439_v11 = vpop.f32.mrb[1].mxu0 }
 0x12d   : > { %v263_v12 = vmax.f32 %v260_v10, 0.0 }
 0x12f   : > { %v268_v13 = vrot.slane %v263_v12, 4  ;;  %v277_v14 = vmul.f32 %v263_v12, %v263_v12 }
 0x131   : > { %v269_v15 = vadd.f32 %v268_v13, %v263_v12  ;;  %v278_v16 = vrot.slane %v277_v14, 4 }
 0x133   : > { %v270_v18 = vrot.slane %v269_v15, 2  ;;  %v279_v19 = vadd.f32 %v278_v16, %v277_v14 }
 0x135   : > { %v271_v20 = vadd.f32 %v270_v18, %v269_v15  ;;  %v280_v21 = vrot.slane %v279_v19, 2 }
 0x137   : > { %v272_v22 = vrot.slane %v271_v20, 1  ;;  %v281_v23 = vadd.f32 %v280_v21, %v279_v19 }
 0x139   : > { %v273_v25 = vadd.f32 %v272_v22, %v271_v20  ;;  %v282_v26 = vrot.slane %v281_v23, 1 }
 0x13b   : > { %v274_v28 = vadd.f32 %v273_v25, %v267_v24  ;;  %v283_v29 = vadd.f32 %v282_v26, %v281_v23 }
 0x13d   : > { %275 = vst [vmem:[#allocation3] sm:$0x1] %v274_v28  ;;  %v284_v30 = vadd.f32 %v283_v29, %v276_v27 }
 0x13f   : > { %285 = vst [vmem:[#allocation3 + $0x1] sm:$0x1] %v284_v30 }
 0x140 PF: > { %p423_p4 = scmp.ne.s32.totalorder %s577_s9, 1 }
 0x141   : > { %v295_v39 = vld [vmem:[#allocation7 + $0xb] sm:$0x1] (!%p423_p4)  ;;  %v296_v42 = vld [vmem:[#allocation7 + $0xc] sm:$0x1] (!%p423_p4)  ;;  %v297_v43 = vld [vmem:[#allocation7 + $0xd] sm:$0x1] (!%p423_p4) }
 0x142   : > { %291 = sbr.rel (%p423_p4) target bundleno = 638 (0x27e), region = 48  ;;  %vm314_vm5 = vcmask (!%p423_p4), 1040384   ;;  %v596_v51 = vmov (!%p423_p4), 0   ;;  %v298_v52 = vld [vmem:[#allocation7 + $0xe] sm:$0x1] (!%p423_p4)  ;;  %vm339_vm6 = vcmask (!%p423_p4), 7168  }
 0x143   : > { %496 = vset.pattern.permute.xlu0 (!%p423_p4), %v596_v51 }
 0x144   : > { %v299_v31 = vld [vmem:[#allocation3] sm:$0x1] (!%p423_p4) }
 0x145   : > { %v300_v33 = vmul.f32 (!%p423_p4), 0.125, %v299_v31 }
 0x146   : > { %v301_v32 = vld [vmem:[#allocation3 + $0x1] sm:$0x1] (!%p423_p4) }
 0x147   : > { %v302_v34 = vmul.f32 (!%p423_p4), 0.125, %v301_v32  ;;  %v303_v35 = vmul.f32 (!%p423_p4), %v300_v33, %v300_v33 }
 0x149   : > { %v304_v36 = vsub.f32 %v302_v34, %v303_v35 }
 0x14b   : > { %v305_v37 = vmax.f32 %v304_v36, 0.0 }
 0x14d   : > { %v306_v38 = vadd.f32 1e-05, %v305_v37 }
 0x14f   : > { %497 = vrsqrt.f32 %v306_v38 }
 0x159   : > { %v498_v40 = vpop.eup %497 }
 0x15a   : > { %v308_v41 = vmul.f32 %v498_v40, %v295_v39 }
 0x15c   : > { %v309_v44 = vmul.f32 %v308_v41, %v300_v33  ;;  %v311_v45 = vmul.f32 %v308_v41, %v297_v43 }
 0x15e   : > { %v310_v46 = vsub.f32 %v296_v42, %v309_v44  ;;  %312 = vst [vmem:[#allocation4] sm:$0x1] %v311_v45 }
 0x160   : > { %v313_v47 = vmul.f32 %v310_v46, %v297_v43 }
 0x162   : > { %v315_v48 = vsel %vm314_vm5, %v313_v47, 0.0 }
 0x163   : > { %316 = vadd.xlane.f32.xlu0 %v315_v48 }
 0x165   : > { %v424_v49 = vld [vmem:[#allocation4] ss:$0 sm:$0xff] }
 0x166   : > { %v331_v50 = vmul.f32 %v424_v49, %v263_v12 }
 0x168   : > { %332 = vadd.xlane.f32.xlu1 %v331_v50 }
 0x1f0   : > { %v317_v53 = vpop.xlane.xlu0 %316 }
 0x1f1   : > { %v318_v54 = vadd.f32 %v317_v53, %v298_v52 }
 0x1f3   : > { %321 = vperm.xlu0 %496, %v318_v54  }
 0x1f5   : > { %v333_v56 = vpop.xlane.xlu1 %332 }
 0x272   : > { %v322_v55 = vpop.permute.xlu0 %321 }
 0x273   : > { %324 = vst [vmem:[#allocation4 + $0x1] sm:$0x1] %v322_v55 }
 0x27a   : > { %v425_v57 = vld [vmem:[#allocation4 + $0x1] ss:$0 sm:$0xff] }
 0x27b   : > { %v338_v58 = vadd.f32 %v425_v57, %v333_v56 }
 0x27d   : > { %340 = vst.msk [vmem:[%s728_s2] sm:$0xff] %vm339_vm6, %v338_v58 }
 0x27e PF: > { %s14_s11 = sadd.s32 1, %s585_s11   ;;  %s737_s9 = smov %s581_s10 }
 0x27f   : > { %p11_p3 = scmp.ge.s32.totalorder %s14_s11, 4   ;;  %s738_s10 = smov %s740_s13 }
 0x281   :  { %13 = sbr.rel (!%p11_p3) target bundleno = 3 (0x3), region = 81 }
 0x288   :  { %360 = vsyncpa [#allocation6], 1 }
 0x289   :  { %362 = vsyncpa [#allocation6 + $0x1], 1 }
 0x28a   :  { %363 = vsyncpa [#allocation8], 1 }

</bundles_post_ra>
